<compile_context>
chip_gen: v7x
topology: tpu7x:2x2x1
jax: 0.10.0
libtpu: 0.0.40
codegen_flags: <defaults>
</compile_context>

<pallas_src>
import math

import jax
import jax.numpy as jnp
from jax.experimental import pallas as pl
from jax.experimental.pallas import tpu as pltpu


def position_encoder_kernel(x_ref, sig_ref, o_ref):
    """Broadcast-add of the positional signal onto one activation tile.

    x_ref  : (B, TN)  activation tile, (D, L) flattened along the lane axis
    sig_ref: (1, TN)  positional-signal tile (shared across the batch)
    o_ref  : (B, TN)  output tile (aliased onto x's HBM buffer)
    """
    # NOTE: the signal was already cast to x.dtype in the wrapper, matching the
    # PyTorch in-place `x += signal` numerics.  Do not "upgrade" this to an
    # f32 accumulate for bf16 activations — it would change numerics.
    o_ref[...] = x_ref[...] + sig_ref[...]


def make_signal(hidden_size, max_length=512, min_timescale=1.0,
                max_timescale=10000.0):
    """Build the sinusoidal table exactly like the PyTorch __init__.

    Returns shape (max_length, hidden_size): sin block then cos block along the
    hidden axis, zero-padded if hidden_size is odd.  Computed once at init.
    """
    position = jnp.arange(max_length, dtype=jnp.float32)
    num_timescales = hidden_size // 2
    # Guard the hidden_size == 2 divide-by-zero that exists in the PyTorch code.
    denom = max(float(num_timescales) - 1.0, 1.0)
    log_timescale_increment = (
        math.log(float(max_timescale) / float(min_timescale)) / denom)
    inv_timescales = min_timescale * jnp.exp(
        jnp.arange(num_timescales, dtype=jnp.float32) * -log_timescale_increment)
    scaled_time = position[:, None] * inv_timescales[None, :]      # (max_len, nt)
    signal = jnp.concatenate(
        [jnp.sin(scaled_time), jnp.cos(scaled_time)], axis=1)       # (max_len, 2*nt)
    pad = hidden_size % 2
    if pad:
        signal = jnp.pad(signal, ((0, 0), (0, pad)))
    return signal                                                   # (max_len, hidden)


def _pick_tile_n(B, N, itemsize, budget_bytes=4 << 20, min_split_bytes=512 << 10):
    """Pick the lane-axis tile TN for (B, TN) blocks of the flattened x.

    Preferences:
      * TN divides N and is a multiple of 128 (unmasked lane-dense stores, no
        ragged / padded tail block),
      * the (B, TN) slab is as large as possible under `budget_bytes` (big DMAs
        amortize the ~0.35 us per-grid-step overhead),
      * keep >= 2 grid steps when each half still moves >= min_split_bytes, so
        the parallel axis can shard across v7x's two TensorCores.
    """
    best = None
    for tn in range(128, N + 1, 128):
        if N % tn == 0 and B * tn * itemsize <= budget_bytes:
            best = tn
    if best is None:
        # Either 128 does not divide N (fall back to one full-width block,
        # correctness preserved) or even a 128-wide slab exceeds the budget
        # (take 128, the smallest legal lane-dense tile).
        best = 128 if N % 128 == 0 else N
    if best == N and N % 256 == 0 and B * (N // 2) * itemsize >= min_split_bytes:
        best = N // 2
    return int(best)


def position_encoder_forward(x, signal_t):
    """x: (B, D, L); signal_t: (D, max_length) f32, pre-transposed once at init."""
    B, D, L = x.shape
    assert L <= signal_t.shape[1], (
        f"context length {L} exceeds max_length {signal_t.shape[1]}")
    N = D * L

    # Contiguous (free) reshapes: flatten (D, L) so the lane axis is a multiple
    # of 128 even when L % 128 != 0.
    x2 = x.reshape(B, N)
    # Cast the signal to the activation dtype once here, not per tile.
    sig2 = signal_t[:, :L].astype(x.dtype).reshape(1, N)

    tn = _pick_tile_n(B, N, x.dtype.itemsize)
    grid = (pl.cdiv(N, tn),)

    out2 = pl.pallas_call(
        position_encoder_kernel,
        out_shape=jax.ShapeDtypeStruct((B, N), x.dtype),
        grid=grid,
        in_specs=[
            pl.BlockSpec((B, tn), lambda j: (0, j)),
            pl.BlockSpec((1, tn), lambda j: (0, j)),
        ],
        out_specs=pl.BlockSpec((B, tn), lambda j: (0, j)),
        # In-place: alias the output onto x's buffer (1 read + 1 write of x is
        # the irreducible HBM traffic of this op).
        input_output_aliases={0: 0},
        compiler_params=pltpu.CompilerParams(
            dimension_semantics=("parallel",),
            # 2 pipeline buffers x (x + out + signal) slabs at the 4 MiB budget
            # can reach ~24 MiB; v5e's default scoped VMEM is only 16 MiB.
            vmem_limit_bytes=32 << 20,
        ),
        cost_estimate=pl.CostEstimate(
            flops=B * N,
            transcendentals=0,
            bytes_accessed=2 * B * N * x.dtype.itemsize + N * x.dtype.itemsize,
        ),
    )(x2, sig2)
    return out2.reshape(B, D, L)


def position_encoder_reference(x, signal):
    """Pure-JAX reference mirroring the PyTorch forward (transpose, add, transpose)."""
    B, D, L = x.shape
    xt = jnp.transpose(x, (0, 2, 1))            # (B, L, D)
    xt = xt + signal[None, :L, :]
    return jnp.transpose(xt, (0, 2, 1))         # (B, D, L)


if __name__ == "__main__":
    # Small shapes consistent with the module: x = [batch, hidden_size, context_len].
    # L deliberately NOT a multiple of 128 to exercise the flattened lane-dense path.
    B, hidden, L = 2, 32, 112
    max_length = 512

    key = jax.random.PRNGKey(0)
    x = jax.random.normal(key, (B, hidden, L), jnp.float32)

    # "Module init": build the sinusoidal table once and transpose it once so
    # the forward path contains no per-call transposes.
    signal = make_signal(hidden, max_length)     # (max_length, hidden), f32
    signal_t = jnp.transpose(signal)             # (hidden, max_length)

    fwd = jax.jit(position_encoder_forward)
    out = jax.block_until_ready(fwd(x, signal_t))

    ref = position_encoder_reference(x, signal)
    assert out.shape == (B, hidden, L), out.shape
    assert jnp.allclose(out, ref, atol=1e-6, rtol=1e-6), "mismatch vs reference"

    print("KERNEL_OK")
</pallas_src>

<mosaic_0001>
module attributes {stable_mosaic.version = 11 : i64} {
  func.func @position_encoder_kernel(%arg0: i32, %arg1: memref<2x3584xf32, #tpu.memory_space<vmem>>, %arg2: memref<1x3584xf32, #tpu.memory_space<vmem>>, %arg3: memref<2x3584xf32, #tpu.memory_space<vmem>>) attributes {dimension_semantics = [#tpu.dimension_semantics<parallel>], iteration_bounds = array<i64: 1>, scalar_prefetch = 0 : i64, scratch_operands = 0 : i64, tpu.core_type = #tpu.core_type<tc>, window_params = [{transform_indices = @transform_0, window_bounds = array<i64: 2, 3584>}, {transform_indices = @transform_1, window_bounds = array<i64: 1, 3584>}, {transform_indices = @transform_2, window_bounds = array<i64: 2, 3584>}]} {
    %c0 = arith.constant 0 : index
    %c0_0 = arith.constant 0 : index
    %0 = vector.load %arg1[%c0, %c0_0] : memref<2x3584xf32, #tpu.memory_space<vmem>>, vector<2x3584xf32>
    %c0_1 = arith.constant 0 : index
    %c0_2 = arith.constant 0 : index
    %1 = vector.load %arg2[%c0_1, %c0_2] : memref<1x3584xf32, #tpu.memory_space<vmem>>, vector<1x3584xf32>
    %2 = vector.broadcast %1 : vector<1x3584xf32> to vector<2x3584xf32>
    %3 = arith.addf %0, %2 : vector<2x3584xf32>
    %c0_3 = arith.constant 0 : index
    %c0_4 = arith.constant 0 : index
    %4 = vector.load %arg3[%c0_3, %c0_4] : memref<2x3584xf32, #tpu.memory_space<vmem>>, vector<2x3584xf32>
    tpu.vector_store %arg3[%c0_3, %c0_4], %3 {strides = array<i32>} : memref<2x3584xf32, #tpu.memory_space<vmem>>, vector<2x3584xf32>,
    return
  }
  func.func @transform_0(%arg0: i32) -> (i32, i32) {
    %c0_i32 = arith.constant 0 : i32
    %c0_i32_0 = arith.constant 0 : i32
    return %c0_i32, %arg0 : i32, i32
  }
  func.func @transform_1(%arg0: i32) -> (i32, i32) {
    %c0_i32 = arith.constant 0 : i32
    %c0_i32_0 = arith.constant 0 : i32
    return %c0_i32, %arg0 : i32, i32
  }
  func.func @transform_2(%arg0: i32) -> (i32, i32) {
    %c0_i32 = arith.constant 0 : i32
    %c0_i32_0 = arith.constant 0 : i32
    return %c0_i32, %arg0 : i32, i32
  }
}

</mosaic_0001>

<bundles_post_ra>
// kernel: position_encoder_forward.1
= control target key start
LH: loop header
LB: loop body
LE: loop exit
PB: predicated region body
PF: predicated region fallthrough
CT: control target
= control target key end

     0   :  { %v26_v0 = vlaneseq  ;;  %v283_v1 = vmov 1983009808   ;;  %s413_s1 = inlined_call_operand.vmem [shape: f32[1,3584], index: 1, kind: input, shape index: {}]   ;;  %s414_s0 = inlined_call_operand.vmem [shape: f32[2,3584], index: 0, kind: input, shape index: {}, may-alias: {0,2}]   ;;  %s415_s2 = inlined_call_operand.vmem [shape: f32[2,3584], index: 2, kind: output, shape index: {}, may-alias: {0,2}]  }
   0x1   :  { %v141_v2 = vunpack.c.l.s4 %v283_v1  ;;  %v18_v4 = vld [vmem:[%s413_s1] sm:$0xff]  ;;  %v19_v14 = vld [vmem:[%s413_s1 + $0x8] sm:$0xff]  ;;  %v20_v35 = vld [vmem:[%s413_s1 + $0x10] sm:$0xff] }
   0x2   :  { %v27_v3 = vshrl.u32 %v26_v0, 7  ;;  %v11_v36 = vld [vmem:[%s414_s0] sm:$0xff]  ;;  %v12_v50 = vld [vmem:[%s414_s0 + $0x8] sm:$0xff]  ;;  %v13_v51 = vld [vmem:[%s414_s0 + $0x10] sm:$0xff] }
   0x3   :  { %v142_v5 = vunpack.c.0.s8 %v141_v2  ;;  %v21_v63 = vld [vmem:[%s413_s1 + $0x18] sm:$0xf] }
   0x4   :  { %v302_v6 = vsub.s32 0, %v27_v3  ;;  %v304_v7 = vsub.s32 1, %v27_v3  ;;  %v306_v8 = vsub.s32 2, %v27_v3  ;;  %v308_v9 = vsub.s32 3, %v27_v3 }
   0x5   :  { %v310_v10 = vsub.s32 %v142_v5, %v27_v3  ;;  %v312_v11 = vsub.s32 4, %v27_v3  ;;  %v314_v12 = vsub.s32 5, %v27_v3  ;;  %v316_v13 = vsub.s32 6, %v27_v3 }
   0x6   :  { %v29_v15 = vrot.slane %v18_v4, %v302_v6  ;;  %v33_v16 = vrot.slane %v18_v4, %v304_v7  ;;  %v37_v17 = vrot.slane %v18_v4, %v306_v8  ;;  %v41_v18 = vrot.slane %v18_v4, %v308_v9 }
   0x7   :  { %v45_v19 = vrot.slane %v18_v4, %v312_v11  ;;  %v49_v20 = vrot.slane %v18_v4, %v314_v12  ;;  %v53_v21 = vrot.slane %v18_v4, %v316_v13  ;;  %v328_v22 = vsub.s32 7, %v27_v3 }
   0x8   :  { %v138_v23 = vcombine.low %v29_v15, %v33_v16  ;;  %v139_v24 = vcombine.low %v37_v17, %v41_v18  ;;  %v61_v25 = vrot.slane %v19_v14, %v302_v6  ;;  %v65_v26 = vrot.slane %v19_v14, %v304_v7 }
   0x9   :  { %v57_v27 = vrot.slane %v18_v4, %v328_v22  ;;  %v155_v28 = vcombine.low %v45_v19, %v49_v20  ;;  %v69_v29 = vrot.slane %v19_v14, %v306_v8  ;;  %v73_v30 = vrot.slane %v19_v14, %v308_v9 }
   0xa   :  { %v146_v31 = vrot.slane %v138_v23, %v310_v10  ;;  %v153_v32 = vrot.slane %v139_v24, %v310_v10  ;;  %v172_v33 = vcombine.low %v61_v25, %v65_v26  ;;  %v77_v34 = vrot.slane %v19_v14, %v312_v11 }
   0xb   :  { %v156_v37 = vcombine.low %v53_v21, %v57_v27  ;;  %v163_v38 = vrot.slane %v155_v28, %v310_v10  ;;  %v173_v39 = vcombine.low %v69_v29, %v73_v30  ;;  %v81_v40 = vrot.slane %v19_v14, %v314_v12 }
   0xc   :  { %v154_v41 = vcombine.low %v146_v31, %v153_v32  ;;  %v180_v42 = vrot.slane %v172_v33, %v310_v10  ;;  %v85_v43 = vrot.slane %v19_v14, %v316_v13  ;;  %v89_v44 = vrot.slane %v19_v14, %v328_v22 }
   0xd   :  { %v170_v45 = vrot.slane %v156_v37, %v310_v10  ;;  %v187_v46 = vrot.slane %v173_v39, %v310_v10  ;;  %v189_v47 = vcombine.low %v77_v34, %v81_v40  ;;  %v93_v48 = vrot.slane %v20_v35, %v302_v6 }
   0xe   :  { %v264_v49 = vadd.f32 %v154_v41, %v11_v36  ;;  %v190_v52 = vcombine.low %v85_v43, %v89_v44  ;;  %v97_v53 = vrot.slane %v20_v35, %v304_v7  ;;  %v101_v54 = vrot.slane %v20_v35, %v306_v8 }
   0xf   :  { %v171_v55 = vcombine.low %v163_v38, %v170_v45  ;;  %v188_v56 = vcombine.low %v180_v42, %v187_v46  ;;  %v197_v57 = vrot.slane %v189_v47, %v310_v10  ;;  %v105_v58 = vrot.slane %v20_v35, %v308_v9 }
  0x10   :  { %271 = vst [vmem:[%s415_s2] sm:$0xff] %v264_v49  ;;  %v204_v59 = vrot.slane %v190_v52, %v310_v10  ;;  %v206_v60 = vcombine.low %v93_v48, %v97_v53  ;;  %v109_v61 = vrot.slane %v20_v35, %v312_v11  ;;  %v113_v62 = vrot.slane %v20_v35, %v314_v12 }
  0x11   :  { %v265_v0 = vadd.f32 %v171_v55, %v12_v50  ;;  %v266_v1 = vadd.f32 %v188_v56, %v13_v51  ;;  %v207_v3 = vcombine.low %v101_v54, %v105_v58  ;;  %v117_v4 = vrot.slane %v20_v35, %v316_v13 }
  0x12   :  { %v205_v5 = vcombine.low %v197_v57, %v204_v59  ;;  %v214_v14 = vrot.slane %v206_v60, %v310_v10  ;;  %v121_v11 = vrot.slane %v20_v35, %v328_v22  ;;  %v223_v15 = vcombine.low %v109_v61, %v113_v62 }
  0x13   :  { %v221_v12 = vrot.slane %v207_v3, %v310_v10  ;;  %v125_v16 = vrot.slane %v21_v63, %v302_v6  ;;  %v129_v13 = vrot.slane %v21_v63, %v304_v7  ;;  %v133_v17 = vrot.slane %v21_v63, %v306_v8 }
  0x14   :  { %v224_v20 = vcombine.low %v117_v4, %v121_v11  ;;  %v231_v21 = vrot.slane %v223_v15, %v310_v10  ;;  %v137_v22 = vrot.slane %v21_v63, %v308_v9 }
  0x15   :  { %v222_v23 = vcombine.low %v214_v14, %v221_v12  ;;  %v240_v24 = vcombine.low %v125_v16, %v129_v13 }
  0x16   :  { %v238_v6 = vrot.slane %v224_v20, %v310_v10  ;;  %v241_v7 = vcombine.low %v133_v17, %v137_v22 }
  0x17   :  { %v14_v2 = vld [vmem:[%s414_s0 + $0x18] sm:$0xff]  ;;  %v248_v26 = vrot.slane %v240_v24, %v310_v10 }
  0x18   :  { %272 = vst [vmem:[%s415_s2 + $0x8] sm:$0xff] %v265_v0  ;;  %273 = vst [vmem:[%s415_s2 + $0x10] sm:$0xff] %v266_v1  ;;  %v267_v18 = vadd.f32 %v205_v5, %v14_v2  ;;  %v239_v27 = vcombine.low %v231_v21, %v238_v6  ;;  %v255_v28 = vrot.slane %v241_v7, %v310_v10 }
  0x1a   :  { %v256_v30 = vcombine.low %v248_v26, %v255_v28 }
  0x1f   :  { %v15_v19 = vld [vmem:[%s414_s0 + $0x20] sm:$0xff] }
  0x20   :  { %274 = vst [vmem:[%s415_s2 + $0x18] sm:$0xff] %v267_v18  ;;  %v268_v8 = vadd.f32 %v222_v23, %v15_v19 }
  0x27   :  { %v16_v25 = vld [vmem:[%s414_s0 + $0x28] sm:$0xff] }
  0x28   :  { %275 = vst [vmem:[%s415_s2 + $0x20] sm:$0xff] %v268_v8  ;;  %v269_v29 = vadd.f32 %v239_v27, %v16_v25 }
  0x2f   :  { %v17_v9 = vld [vmem:[%s414_s0 + $0x30] sm:$0xff] }
  0x30   :  { %276 = vst [vmem:[%s415_s2 + $0x28] sm:$0xff] %v269_v29  ;;  %v270_v31 = vadd.f32 %v256_v30, %v17_v9 }
  0x32   :  { %277 = vst [vmem:[%s415_s2 + $0x30] sm:$0xff] %v270_v31 }

</bundles_post_ra>
